<compile_context>
chip_gen: v7x
topology: tpu7x:2x2x1
jax: 0.10.0
libtpu: 0.0.40
codegen_flags: <defaults>
</compile_context>

<pallas_src>
import jax
import jax.numpy as jnp
from jax.experimental import pallas as pl
from jax.experimental.pallas import tpu as pltpu

D_IN = 28 * 28      # 784 (kept unpadded; full-extent last-dim block is legal)
H1 = 512
H2 = 256
D_OUT = 10
D_OUT_PAD = 128     # lane-dense padded logits


def mlp_kernel(x_ref, w1_ref, b1_ref, w2_ref, b2_ref, w3_ref, b3_ref, o_ref):
    # Linear(784 -> 512) + ReLU  (bf16 operands, f32 accumulate on the MXU)
    x = x_ref[...].astype(jnp.bfloat16)
    h1 = jnp.dot(x, w1_ref[...], preferred_element_type=jnp.float32)
    h1 = jnp.maximum(h1 + b1_ref[...], 0.0).astype(jnp.bfloat16)  # end f32 live range
    # Linear(512 -> 256) + ReLU
    h2 = jnp.dot(h1, w2_ref[...], preferred_element_type=jnp.float32)
    h2 = jnp.maximum(h2 + b2_ref[...], 0.0).astype(jnp.bfloat16)
    # Linear(256 -> 10), padded to 128 output lanes
    logits = jnp.dot(h2, w3_ref[...], preferred_element_type=jnp.float32)
    logits = logits + b3_ref[...]
    # Dropout(p=0.2) is identity at inference time.
    # TODO(synk): training-mode dropout (stochastic mask via pltpu.prng_*) not emitted.
    o_ref[...] = logits.astype(o_ref.dtype)


def neural_network_forward(x, params):
    """x: (B, 1, 28, 28) float32 NCHW. Returns logits (B, 10) float32."""
    w1, b1, w2, b2, w3, b3 = params
    B = x.shape[0]

    # nn.Flatten(): free reshape, no pad, no copy.
    x_flat = x.reshape(B, D_IN)

    # Batch tiling: sublane-aligned tile, capped at 1024 rows. Ragged tail is
    # handled by the cdiv grid (partial-block OOB writes are dropped).
    tile_b = min(1024, max(8, ((B + 7) // 8) * 8))
    grid = (pl.cdiv(B, tile_b),)

    const = lambda i: (0, 0)   # weights/biases: same (resident) block every step
    in_specs = [
        pl.BlockSpec((tile_b, D_IN), lambda i: (i, 0)),   # x tile (unpadded K=784)
        pl.BlockSpec((D_IN, H1), const),                  # w1
        pl.BlockSpec((1, H1), const),                     # b1
        pl.BlockSpec((H1, H2), const),                    # w2
        pl.BlockSpec((1, H2), const),                     # b2
        pl.BlockSpec((H2, D_OUT_PAD), const),             # w3 (padded N)
        pl.BlockSpec((1, D_OUT_PAD), const),              # b3 (padded N)
    ]
    out_spec = pl.BlockSpec((tile_b, D_OUT_PAD), lambda i: (i, 0))

    flops = 2 * B * (D_IN * H1 + H1 * H2 + H2 * D_OUT_PAD)
    bytes_accessed = (
        B * D_IN * 4                                      # input (f32)
        + (w1.size + w2.size + w3.size) * 2               # bf16 weights
        + (b1.size + b2.size + b3.size) * 4               # f32 biases
        + B * D_OUT_PAD * 4                               # output (f32)
    )

    out = pl.pallas_call(
        mlp_kernel,
        out_shape=jax.ShapeDtypeStruct((B, D_OUT_PAD), jnp.float32),
        grid=grid,
        in_specs=in_specs,
        out_specs=out_spec,
        compiler_params=pltpu.CompilerParams(
            dimension_semantics=("parallel",),
            vmem_limit_bytes=32 * 1024 * 1024),
        cost_estimate=pl.CostEstimate(
            flops=flops, transcendentals=0, bytes_accessed=bytes_accessed),
    )(x_flat, w1, b1, w2, b2, w3, b3)

    return out[:, :D_OUT]


def init_params(key):
    """Deterministic init matching the PyTorch module's Linear layers.
    Weights stored transposed (in, out); only the final layer's output dim is
    zero-padded (10 -> 128); weights cast to bf16, biases kept f32."""
    k1, k2, k3, k4, k5, k6 = jax.random.split(key, 6)

    def lin(kw, kb, fan_in, fan_out, pad_out):
        bound = 1.0 / jnp.sqrt(fan_in)
        w = jax.random.uniform(kw, (fan_in, fan_out), jnp.float32, -bound, bound)
        b = jax.random.uniform(kb, (1, fan_out), jnp.float32, -bound, bound)
        w = jnp.pad(w, ((0, 0), (0, pad_out - fan_out)))
        b = jnp.pad(b, ((0, 0), (0, pad_out - fan_out)))
        return w.astype(jnp.bfloat16), b  # biases stay f32 (tiny, better accuracy)

    w1, b1 = lin(k1, k2, D_IN, H1, H1)
    w2, b2 = lin(k3, k4, H1, H2, H2)
    w3, b3 = lin(k5, k6, H2, D_OUT, D_OUT_PAD)
    return (w1, b1, w2, b2, w3, b3)


def reference_forward(x, params):
    """Pure-JAX reference mirroring the kernel's bf16-operand / f32-accumulate math."""
    w1, b1, w2, b2, w3, b3 = params
    xf = x.reshape(x.shape[0], -1).astype(jnp.bfloat16)
    h1 = jnp.maximum(
        jnp.dot(xf, w1, preferred_element_type=jnp.float32) + b1, 0.0)
    h2 = jnp.maximum(
        jnp.dot(h1.astype(jnp.bfloat16), w2, preferred_element_type=jnp.float32) + b2,
        0.0)
    logits = jnp.dot(h2.astype(jnp.bfloat16), w3,
                     preferred_element_type=jnp.float32) + b3
    return logits[:, :D_OUT]


if __name__ == "__main__":
    key = jax.random.PRNGKey(0)
    kx, kp = jax.random.split(key)
    # Small batch, MNIST-like input implied by the 28*28 flatten.
    x = jax.random.normal(kx, (2, 1, 28, 28), dtype=jnp.float32)
    params = init_params(kp)

    out = neural_network_forward(x, params)
    out = jax.block_until_ready(out)

    ref = reference_forward(x, params)
    assert out.shape == (2, 10)
    assert jnp.allclose(out, ref, atol=1e-2, rtol=1e-2), (
        f"max abs err {jnp.max(jnp.abs(out - ref))}")
    print("KERNEL_OK")
</pallas_src>

<mosaic_0001>
module attributes {stable_mosaic.version = 11 : i64} {
  func.func @mlp_kernel(%arg0: i32, %arg1: memref<8x784xf32, #tpu.memory_space<vmem>>, %arg2: memref<784x512xbf16, #tpu.memory_space<vmem>>, %arg3: memref<1x512xf32, #tpu.memory_space<vmem>>, %arg4: memref<512x256xbf16, #tpu.memory_space<vmem>>, %arg5: memref<1x256xf32, #tpu.memory_space<vmem>>, %arg6: memref<256x128xbf16, #tpu.memory_space<vmem>>, %arg7: memref<1x128xf32, #tpu.memory_space<vmem>>, %arg8: memref<8x128xf32, #tpu.memory_space<vmem>>) attributes {dimension_semantics = [#tpu.dimension_semantics<parallel>], iteration_bounds = array<i64: 1>, scalar_prefetch = 0 : i64, scratch_operands = 0 : i64, tpu.core_type = #tpu.core_type<tc>, window_params = [{transform_indices = @transform_0, window_bounds = array<i64: 8, 784>}, {pipeline_mode = #tpu.pipeline_mode<synchronous>, transform_indices = @transform_1, window_bounds = array<i64: 784, 512>}, {pipeline_mode = #tpu.pipeline_mode<synchronous>, transform_indices = @transform_2, window_bounds = array<i64: 1, 512>}, {pipeline_mode = #tpu.pipeline_mode<synchronous>, transform_indices = @transform_3, window_bounds = array<i64: 512, 256>}, {pipeline_mode = #tpu.pipeline_mode<synchronous>, transform_indices = @transform_4, window_bounds = array<i64: 1, 256>}, {pipeline_mode = #tpu.pipeline_mode<synchronous>, transform_indices = @transform_5, window_bounds = array<i64: 256, 128>}, {pipeline_mode = #tpu.pipeline_mode<synchronous>, transform_indices = @transform_6, window_bounds = array<i64: 1, 128>}, {transform_indices = @transform_7, window_bounds = array<i64: 8, 128>}]} {
    %c0 = arith.constant 0 : index
    %c0_0 = arith.constant 0 : index
    %0 = vector.load %arg1[%c0, %c0_0] : memref<8x784xf32, #tpu.memory_space<vmem>>, vector<8x784xf32>
    %1 = arith.truncf %0 : vector<8x784xf32> to vector<8x784xbf16>
    %c0_1 = arith.constant 0 : index
    %c0_2 = arith.constant 0 : index
    %2 = vector.load %arg2[%c0_1, %c0_2] : memref<784x512xbf16, #tpu.memory_space<vmem>>, vector<784x512xbf16>
    %cst = arith.constant dense<0.000000e+00> : vector<8x512xf32>
    %3 = tpu.matmul %1, %2, %cst {dimension_numbers = #tpu.dot_dimension_numbers<[1], [0], [0], [1], [0, 0, 1, 1], [], []>} : vector<8x784xbf16>, vector<784x512xbf16>, vector<8x512xf32> -> vector<8x512xf32>
    %c0_3 = arith.constant 0 : index
    %c0_4 = arith.constant 0 : index
    %4 = vector.load %arg3[%c0_3, %c0_4] : memref<1x512xf32, #tpu.memory_space<vmem>>, vector<1x512xf32>
    %5 = vector.broadcast %4 : vector<1x512xf32> to vector<8x512xf32>
    %6 = arith.addf %3, %5 : vector<8x512xf32>
    %cst_5 = arith.constant 0.000000e+00 : f32
    %7 = vector.broadcast %cst_5 : f32 to vector<8x512xf32>
    %8 = arith.maximumf %6, %7 : vector<8x512xf32>
    %9 = arith.truncf %8 : vector<8x512xf32> to vector<8x512xbf16>
    %c0_6 = arith.constant 0 : index
    %c0_7 = arith.constant 0 : index
    %10 = vector.load %arg4[%c0_6, %c0_7] : memref<512x256xbf16, #tpu.memory_space<vmem>>, vector<512x256xbf16>
    %cst_8 = arith.constant dense<0.000000e+00> : vector<8x256xf32>
    %11 = tpu.matmul %9, %10, %cst_8 {dimension_numbers = #tpu.dot_dimension_numbers<[1], [0], [0], [1], [0, 0, 1, 1], [], []>} : vector<8x512xbf16>, vector<512x256xbf16>, vector<8x256xf32> -> vector<8x256xf32>
    %c0_9 = arith.constant 0 : index
    %c0_10 = arith.constant 0 : index
    %12 = vector.load %arg5[%c0_9, %c0_10] : memref<1x256xf32, #tpu.memory_space<vmem>>, vector<1x256xf32>
    %13 = vector.broadcast %12 : vector<1x256xf32> to vector<8x256xf32>
    %14 = arith.addf %11, %13 : vector<8x256xf32>
    %cst_11 = arith.constant 0.000000e+00 : f32
    %15 = vector.broadcast %cst_11 : f32 to vector<8x256xf32>
    %16 = arith.maximumf %14, %15 : vector<8x256xf32>
    %17 = arith.truncf %16 : vector<8x256xf32> to vector<8x256xbf16>
    %c0_12 = arith.constant 0 : index
    %c0_13 = arith.constant 0 : index
    %18 = vector.load %arg6[%c0_12, %c0_13] : memref<256x128xbf16, #tpu.memory_space<vmem>>, vector<256x128xbf16>
    %cst_14 = arith.constant dense<0.000000e+00> : vector<8x128xf32>
    %19 = tpu.matmul %17, %18, %cst_14 {dimension_numbers = #tpu.dot_dimension_numbers<[1], [0], [0], [1], [0, 0, 1, 1], [], []>} : vector<8x256xbf16>, vector<256x128xbf16>, vector<8x128xf32> -> vector<8x128xf32>
    %c0_15 = arith.constant 0 : index
    %c0_16 = arith.constant 0 : index
    %20 = vector.load %arg7[%c0_15, %c0_16] : memref<1x128xf32, #tpu.memory_space<vmem>>, vector<1x128xf32>
    %21 = vector.broadcast %20 : vector<1x128xf32> to vector<8x128xf32>
    %22 = arith.addf %19, %21 : vector<8x128xf32>
    %c0_17 = arith.constant 0 : index
    %c0_18 = arith.constant 0 : index
    %23 = vector.load %arg8[%c0_17, %c0_18] : memref<8x128xf32, #tpu.memory_space<vmem>>, vector<8x128xf32>
    tpu.vector_store %arg8[%c0_17, %c0_18], %22 {strides = array<i32>} : memref<8x128xf32, #tpu.memory_space<vmem>>, vector<8x128xf32>,
    return
  }
  func.func @transform_0(%arg0: i32) -> (i32, i32) {
    %c0_i32 = arith.constant 0 : i32
    %c0_i32_0 = arith.constant 0 : i32
    return %arg0, %c0_i32 : i32, i32
  }
  func.func @transform_1(%arg0: i32) -> (i32, i32) {
    %c0_i32 = arith.constant 0 : i32
    %c0_i32_0 = arith.constant 0 : i32
    %c0_i32_1 = arith.constant 0 : i32
    return %c0_i32, %c0_i32_0 : i32, i32
  }
  func.func @transform_2(%arg0: i32) -> (i32, i32) {
    %c0_i32 = arith.constant 0 : i32
    %c0_i32_0 = arith.constant 0 : i32
    %c0_i32_1 = arith.constant 0 : i32
    return %c0_i32, %c0_i32_0 : i32, i32
  }
  func.func @transform_3(%arg0: i32) -> (i32, i32) {
    %c0_i32 = arith.constant 0 : i32
    %c0_i32_0 = arith.constant 0 : i32
    %c0_i32_1 = arith.constant 0 : i32
    return %c0_i32, %c0_i32_0 : i32, i32
  }
  func.func @transform_4(%arg0: i32) -> (i32, i32) {
    %c0_i32 = arith.constant 0 : i32
    %c0_i32_0 = arith.constant 0 : i32
    %c0_i32_1 = arith.constant 0 : i32
    return %c0_i32, %c0_i32_0 : i32, i32
  }
  func.func @transform_5(%arg0: i32) -> (i32, i32) {
    %c0_i32 = arith.constant 0 : i32
    %c0_i32_0 = arith.constant 0 : i32
    %c0_i32_1 = arith.constant 0 : i32
    return %c0_i32, %c0_i32_0 : i32, i32
  }
  func.func @transform_6(%arg0: i32) -> (i32, i32) {
    %c0_i32 = arith.constant 0 : i32
    %c0_i32_0 = arith.constant 0 : i32
    %c0_i32_1 = arith.constant 0 : i32
    return %c0_i32, %c0_i32_0 : i32, i32
  }
  func.func @transform_7(%arg0: i32) -> (i32, i32) {
    %c0_i32 = arith.constant 0 : i32
    %c0_i32_0 = arith.constant 0 : i32
    return %arg0, %c0_i32 : i32, i32
  }
}

</mosaic_0001>

<bundles_post_ra>
// kernel: tpu_custom_call.1
= control target key start
LH: loop header
LB: loop body
LE: loop exit
PB: predicated region body
PF: predicated region fallthrough
CT: control target
= control target key end

     0   :  { %12 = vsyncpa [#allocation3], 0  ;;  %s3474_s0 = inlined_call_operand.hbm [shape: f32[2,784], index: 0, kind: input, shape index: {}]   ;;  %s3475_s1 = inlined_call_operand.hbm [shape: bf16[784,512], index: 1, kind: input, shape index: {}]   ;;  %s3476_s2 = inlined_call_operand.vmem [shape: f32[1,512], index: 2, kind: input, shape index: {}]   ;;  %s3477_s3 = inlined_call_operand.hbm [shape: bf16[512,256], index: 3, kind: input, shape index: {}]   ;;  %s3478_s4 = inlined_call_operand.vmem [shape: f32[1,256], index: 4, kind: input, shape index: {}]   ;;  %s3479_s5 = inlined_call_operand.hbm [shape: bf16[256,128], index: 5, kind: input, shape index: {}]   ;;  %s3480_s6 = inlined_call_operand.vmem [shape: f32[1,128], index: 6, kind: input, shape index: {}]   ;;  %s3481_s7 = inlined_call_operand.hbm [shape: f32[2,128], index: 7, kind: output, shape index: {}]  }
   0x1   :  { %13 = vsyncpa [#allocation6], 0 }
   0x2   :  { %14 = vsyncpa [#allocation9], 0 }
   0x3   :  { %15 = vsyncpa [#allocation4], 0 }
   0x4   :  { %20 = vsyncadd [#allocation3], 672  ;;  %s3283_s24 = smov [#allocation5]   ;;  %s3165_s28 = scalar_lea.hbm %s3475_s1, 25088 }
   0x5   :  { %s33_s25 = sshll.u32 %s3283_s24, 4  ;;  %p3166_p0 = scmp.ne.s32.totalorder %s3475_s1, %s3165_s28  ;;  %s34_s25 = int_to_ptr.vmem [resolvable:$true] %s33_s25 }
   0x6   :  { %p3169_p1 = scmp.lt.u32.totalorder %s3165_s28, %s3475_s1 }
   0x8   :  { %p3171_p2 = pnand %p3169_p1, %p3166_p0 }
   0xa   :  { %3174 = shalt.err (!%p3171_p2)
}
   0xb   :  { %s3175_s10 = scalar_lea.vmem %s34_s25, 25088  ;;  %p3180_p4 = scmp.lt.s32.totalorder %s34_s25, %s34_s25 }
   0xc   :  { %p3176_p3 = scmp.ne.s32.totalorder %s34_s25, %s3175_s10  ;;  %p3181_p5 = scmp.lt.s32.totalorder %s3175_s10, %s3175_s10 }
   0xe   :  { %p3182_p6 = por %p3181_p5, %p3180_p4 }
  0x10   :  { %p3183_p7 = pnand %p3182_p6, %p3176_p3 }
  0x12   :  { %3186 = shalt.err (!%p3183_p7)
}
  0x13   :  { %s3284_s11 = smov 256   ;;  %s3285_s12 = smov 16  }
  0x14   :  { %39 = dma.hbm_to_vmem [thread:$0]  %s3475_s1, 25088, %s34_s25, [#allocation6], %s3284_s11, %s3284_s11, %s3285_s12  }
  0x15   :  { %s3286_s15 = smov [#allocation2]   ;;  %s3187_s19 = scalar_lea.hbm %s3474_s0, 224 }
  0x16   :  { %s21_s16 = sshll.u32 %s3286_s15, 4  ;;  %p3188_p8 = scmp.ne.s32.totalorder %s3474_s0, %s3187_s19  ;;  %s22_s16 = int_to_ptr.vmem [resolvable:$true] %s21_s16 }
  0x17   :  { %p3191_p9 = scmp.lt.u32.totalorder %s3187_s19, %s3474_s0 }
  0x19   :  { %p3193_p10 = pnand %p3191_p9, %p3188_p8 }
  0x1b   :  { %3196 = shalt.err (!%p3193_p10)
}
  0x1c   :  { %s3197_s24 = scalar_lea.vmem %s22_s16, 224  ;;  %s3201_s1 = scalar_lea.vmem %s22_s16, 896 }
  0x1d   :  { %p3198_p11 = scmp.ne.s32.totalorder %s22_s16, %s3197_s24  ;;  %p3202_p12 = scmp.lt.s32.totalorder %s22_s16, %s22_s16 }
  0x1e   :  { %p3203_p13 = scmp.lt.s32.totalorder %s3201_s1, %s3197_s24 }
  0x20   :  { %p3204_p0 = por %p3203_p13, %p3202_p12 }
  0x22   :  { %p3205_p1 = pnand %p3204_p0, %p3198_p11 }
  0x24   :  { %3208 = shalt.err (!%p3205_p1)
}
  0x25   :  { %s3287_s25 = smov 224   ;;  %s3288_s26 = smov 14  }
  0x26   :  { %27 = dma.hbm_to_vmem [thread:$0]  %s3474_s0, 224, %s22_s16, [#allocation3], %s3287_s25, %s3287_s25, %s3288_s26  }
  0x27   :  { %s3289_s29 = smov [#allocation7]   ;;  %s3209_s10 = scalar_lea.hbm %s3477_s3, 8192 }
  0x28   :  { %s47_s30 = sshll.u32 %s3289_s29, 4  ;;  %p3210_p2 = scmp.ne.s32.totalorder %s3477_s3, %s3209_s10  ;;  %s48_s30 = int_to_ptr.vmem [resolvable:$true] %s47_s30 }
  0x29   :  { %p3213_p3 = scmp.lt.u32.totalorder %s3209_s10, %s3477_s3 }
  0x2b   :  { %p3215_p4 = pnand %p3213_p3, %p3210_p2 }
  0x2d   :  { %3218 = shalt.err (!%p3215_p4)
}
  0x2e   :  { %s3219_s15 = scalar_lea.vmem %s48_s30, 8192  ;;  %p3224_p6 = scmp.lt.s32.totalorder %s48_s30, %s48_s30 }
  0x2f   :  { %p3220_p5 = scmp.ne.s32.totalorder %s48_s30, %s3219_s15  ;;  %p3225_p7 = scmp.lt.s32.totalorder %s3219_s15, %s3219_s15 }
  0x31   :  { %p3226_p8 = por %p3225_p7, %p3224_p6 }
  0x33   :  { %p3227_p9 = pnand %p3226_p8, %p3220_p5 }
  0x35   :  { %3230 = shalt.err (!%p3227_p9)
}
  0x36   :  { %s3290_s0 = smov 128   ;;  %s3291_s16 = smov 8  }
  0x37   :  { %53 = dma.hbm_to_vmem [thread:$0]  %s3477_s3, 8192, %s48_s30, [#allocation6], %s3290_s0, %s3290_s0, %s3291_s16  }
  0x38   :  { %s3292_s19 = smov [#allocation8]   ;;  %s3231_s23 = scalar_lea.hbm %s3479_s5, 2048 }
  0x39   :  { %s61_s20 = sshll.u32 %s3292_s19, 4  ;;  %p3232_p10 = scmp.ne.s32.totalorder %s3479_s5, %s3231_s23  ;;  %s62_s20 = int_to_ptr.vmem [resolvable:$true] %s61_s20 }
  0x3a   :  { %p3235_p11 = scmp.lt.u32.totalorder %s3231_s23, %s3479_s5 }
  0x3c   :  { %p3237_p12 = pnand %p3235_p11, %p3232_p10 }
  0x3e   :  { %3240 = shalt.err (!%p3237_p12)
}
  0x3f   :  { %s3241_s27 = scalar_lea.vmem %s62_s20, 2048  ;;  %p3246_p0 = scmp.lt.s32.totalorder %s62_s20, %s62_s20 }
  0x40   :  { %p3242_p13 = scmp.ne.s32.totalorder %s62_s20, %s3241_s27  ;;  %p3247_p1 = scmp.lt.s32.totalorder %s3241_s27, %s3241_s27 }
  0x42   :  { %p3248_p2 = por %p3247_p1, %p3246_p0 }
  0x44   :  { %p3249_p3 = pnand %p3248_p2, %p3242_p13 }
  0x46   :  { %3252 = shalt.err (!%p3249_p3)
}
  0x47   :  { %s3293_s3 = smov 64   ;;  %s3294_s28 = smov 4  }
  0x48   :  { %67 = dma.hbm_to_vmem [thread:$0]  %s3479_s5, 2048, %s62_s20, [#allocation9], %s3293_s3, %s3293_s3, %s3294_s28  }
  0x49   :  { %3275 = dma.done.wait [#allocation3], 896  }
  0x4a   :  { %3276 = vsyncadd [#allocation3], 4294966400 }
  0x4b   :  { %3277 = dma.done.wait [#allocation6], 33280  }
  0x4c   :  { %3278 = vsyncadd [#allocation6], 4294934016 }
  0x4d   :  { %3279 = dma.done.wait [#allocation9], 2048  }
  0x4e   :  { %3280 = vsyncadd [#allocation9], 4294965248  ;;  %v2747_v0 = vld [vmem:[#allocation5 + $0x4] ss:$16 sps:$4 sm:$0xff]   ;;  %v2751_v2 = vld [vmem:[#allocation5] ss:$16 sps:$4 sm:$0xff]   ;;  %v106_v40 = vlaneseq }
  0x4f   :  { %v2749_v1 = vld [vmem:[#allocation5 + $0x204] ss:$16 sps:$4 sm:$0xff]   ;;  %1386 = vmatprep.subr.bf16.mxu1 %v2747_v0  ;;  %v2752_v3 = vld [vmem:[#allocation5 + $0x200] ss:$16 sps:$4 sm:$0xff]   ;;  %v3295_v38 = vmov 1983009808  }
  0x50   :  { %1427 = vmatprep.subr.bf16.mxu0 %v2749_v1  ;;  %v2753_v4 = vld [vmem:[#allocation5 + $0x24] ss:$16 sps:$4 sm:$0xff]   ;;  %1387 = vmatpush1.bf16.msra.mxu1 %v2751_v2  ;;  %v2757_v6 = vld [vmem:[#allocation5 + $0x20] ss:$16 sps:$4 sm:$0xff]   ;;  %v104_v39 = vunpack.c.l.s4 %v3295_v38  ;;  %v3388_v46 = vshrl.u32 %v106_v40, 7  ;;  %vm1382_vm0 = vcmask 130048  }
  0x51   :  { %1428 = vmatpush1.bf16.msra.mxu0 %v2752_v3  ;;  %v2755_v5 = vld [vmem:[#allocation5 + $0x224] ss:$16 sps:$4 sm:$0xff]   ;;  %1388 = vmatprep.subr.bf16.mxu1 %v2753_v4  ;;  %v2758_v7 = vld [vmem:[#allocation5 + $0x220] ss:$16 sps:$4 sm:$0xff]   ;;  %v2847_v58 = vld [vmem:[#allocation2 + $0x4] ss:$14 sps:$4 sm:$0xff]  }
  0x52   :  { %1429 = vmatprep.subr.bf16.mxu0 %v2755_v5  ;;  %v2759_v8 = vld [vmem:[#allocation5 + $0x44] ss:$16 sps:$4 sm:$0xff]   ;;  %v2763_v10 = vld [vmem:[#allocation5 + $0x40] ss:$16 sps:$4 sm:$0xff]   ;;  %v105_v45 = vunpack.c.0.s8 %v104_v39  ;;  %v2878_v39 = vld [vmem:[#allocation5 + $0x8c] ss:$16 sps:$4 sm:$0xff]  }
  0x53   :  { %v2761_v9 = vld [vmem:[#allocation5 + $0x244] ss:$16 sps:$4 sm:$0xff]   ;;  %v2764_v11 = vld [vmem:[#allocation5 + $0x240] ss:$16 sps:$4 sm:$0xff]  }
  0x54   :  { %1389 = vmatpush1.bf16.msra.mxu1 %v2757_v6  ;;  %v2765_v12 = vld [vmem:[#allocation5 + $0x64] ss:$16 sps:$4 sm:$0xff]   ;;  %v2769_v14 = vld [vmem:[#allocation5 + $0x60] ss:$16 sps:$4 sm:$0xff]   ;;  %v3391_v53 = vsub.s32 %v105_v45, %v3388_v46  ;;  %v2882_v45 = vld [vmem:[#allocation5 + $0xa8] ss:$16 sps:$4 sm:$0xff]  }
  0x55   :  { %1430 = vmatpush1.bf16.msra.mxu0 %v2758_v7  ;;  %1390 = vmatprep.subr.bf16.mxu1 %v2759_v8  ;;  %v2767_v13 = vld [vmem:[#allocation5 + $0x264] ss:$16 sps:$4 sm:$0xff]   ;;  %v2770_v15 = vld [vmem:[#allocation5 + $0x260] ss:$16 sps:$4 sm:$0xff]  }
  0x56   :  { %1431 = vmatprep.subr.bf16.mxu0 %v2761_v9  ;;  %v2771_v16 = vld [vmem:[#allocation5 + $0x84] ss:$16 sps:$4 sm:$0xff]   ;;  %v2775_v18 = vld [vmem:[#allocation5 + $0x80] ss:$16 sps:$4 sm:$0xff]   ;;  %v116_v62 = vrot.slane %v2847_v58, %v3391_v53 }
  0x57   :  { %v2773_v17 = vld [vmem:[#allocation5 + $0x284] ss:$16 sps:$4 sm:$0xff]   ;;  %v2776_v19 = vld [vmem:[#allocation5 + $0x280] ss:$16 sps:$4 sm:$0xff]  }
  0x58   :  { %1391 = vmatpush1.bf16.msra.mxu1 %v2763_v10  ;;  %v2777_v20 = vld [vmem:[#allocation5 + $0xa4] ss:$16 sps:$4 sm:$0xff]   ;;  %v2781_v22 = vld [vmem:[#allocation5 + $0xa0] ss:$16 sps:$4 sm:$0xff]  }
  0x59   :  { %1432 = vmatpush1.bf16.msra.mxu0 %v2764_v11  ;;  %1392 = vmatprep.subr.bf16.mxu1 %v2765_v12  ;;  %v2779_v21 = vld [vmem:[#allocation5 + $0x2a4] ss:$16 sps:$4 sm:$0xff]   ;;  %v2782_v23 = vld [vmem:[#allocation5 + $0x2a0] ss:$16 sps:$4 sm:$0xff]  }
  0x5a   :  { %1433 = vmatprep.subr.bf16.mxu0 %v2767_v13  ;;  %v2783_v24 = vld [vmem:[#allocation5 + $0xc4] ss:$16 sps:$4 sm:$0xff]   ;;  %v2787_v26 = vld [vmem:[#allocation5 + $0xc0] ss:$16 sps:$4 sm:$0xff]  }
  0x5b   :  { %v2785_v25 = vld [vmem:[#allocation5 + $0x2c4] ss:$16 sps:$4 sm:$0xff]   ;;  %v2788_v27 = vld [vmem:[#allocation5 + $0x2c0] ss:$16 sps:$4 sm:$0xff]  }
  0x5c   :  { %1393 = vmatpush1.bf16.msra.mxu1 %v2769_v14  ;;  %v2789_v28 = vld [vmem:[#allocation5 + $0xe4] ss:$16 sps:$4 sm:$0xff]   ;;  %v2793_v30 = vld [vmem:[#allocation5 + $0xe0] ss:$16 sps:$4 sm:$0xff]  }
  0x5d   :  { %1434 = vmatpush1.bf16.msra.mxu0 %v2770_v15  ;;  %1394 = vmatprep.subr.bf16.mxu1 %v2771_v16  ;;  %v2791_v29 = vld [vmem:[#allocation5 + $0x2e4] ss:$16 sps:$4 sm:$0xff]   ;;  %v2794_v31 = vld [vmem:[#allocation5 + $0x2e0] ss:$16 sps:$4 sm:$0xff]  }
  0x5e   :  { %1435 = vmatprep.subr.bf16.mxu0 %v2773_v17  ;;  %v2795_v32 = vld [vmem:[#allocation5 + $0x104] ss:$16 sps:$4 sm:$0xff]   ;;  %v2799_v34 = vld [vmem:[#allocation5 + $0x100] ss:$16 sps:$4 sm:$0xff]  }
  0x5f   :  { %v2797_v33 = vld [vmem:[#allocation5 + $0x304] ss:$16 sps:$4 sm:$0xff]   ;;  %v2800_v35 = vld [vmem:[#allocation5 + $0x300] ss:$16 sps:$4 sm:$0xff]  }
  0x60   :  { %1395 = vmatpush1.bf16.msra.mxu1 %v2775_v18  ;;  %v2801_v36 = vld [vmem:[#allocation5 + $0x124] ss:$16 sps:$4 sm:$0xff]   ;;  %v2805_v41 = vld [vmem:[#allocation5 + $0x120] ss:$16 sps:$4 sm:$0xff]  }
  0x61   :  { %1436 = vmatpush1.bf16.msra.mxu0 %v2776_v19  ;;  %1396 = vmatprep.subr.bf16.mxu1 %v2777_v20  ;;  %v2803_v37 = vld [vmem:[#allocation5 + $0x324] ss:$16 sps:$4 sm:$0xff]   ;;  %v2806_v42 = vld [vmem:[#allocation5 + $0x320] ss:$16 sps:$4 sm:$0xff]  }
  0x62   :  { %1437 = vmatprep.subr.bf16.mxu0 %v2779_v21  ;;  %v2807_v43 = vld [vmem:[#allocation5 + $0x144] ss:$16 sps:$4 sm:$0xff]   ;;  %v2811_v47 = vld [vmem:[#allocation5 + $0x140] ss:$16 sps:$4 sm:$0xff]   ;;  %v2854_v21 = vld [vmem:[#allocation5 + $0xc] ss:$16 sps:$4 sm:$0xff]  }
  0x63   :  { %v2809_v44 = vld [vmem:[#allocation5 + $0x344] ss:$16 sps:$4 sm:$0xff]   ;;  %v2812_v48 = vld [vmem:[#allocation5 + $0x340] ss:$16 sps:$4 sm:$0xff]  }
  0x64   :  { %1397 = vmatpush1.bf16.msra.mxu1 %v2781_v22  ;;  %v2813_v49 = vld [vmem:[#allocation5 + $0x164] ss:$16 sps:$4 sm:$0xff]   ;;  %v2817_v51 = vld [vmem:[#allocation5 + $0x160] ss:$16 sps:$4 sm:$0xff]  }
  0x65   :  { %1438 = vmatpush1.bf16.msra.mxu0 %v2782_v23  ;;  %1398 = vmatprep.subr.bf16.mxu1 %v2783_v24  ;;  %v2815_v50 = vld [vmem:[#allocation5 + $0x364] ss:$16 sps:$4 sm:$0xff]   ;;  %v2818_v52 = vld [vmem:[#allocation5 + $0x360] ss:$16 sps:$4 sm:$0xff]   ;;  %v2852_v24 = vld [vmem:[#allocation5 + $0x8] ss:$16 sps:$4 sm:$0xff]  }
  0x66   :  { %1439 = vmatprep.subr.bf16.mxu0 %v2785_v25  ;;  %v2819_v54 = vld [vmem:[#allocation5 + $0x184] ss:$16 sps:$4 sm:$0xff]   ;;  %v2823_v63 = vld [vmem:[#allocation5 + $0x180] ss:$16 sps:$4 sm:$0xff]  }
  0x67   :  { %v2821_v55 = vld [vmem:[#allocation5 + $0x384] ss:$16 sps:$4 sm:$0xff]   ;;  %v2824_v0 = vld [vmem:[#allocation5 + $0x380] ss:$16 sps:$4 sm:$0xff]  }
  0x68   :  { %1399 = vmatpush1.bf16.msra.mxu1 %v2787_v26  ;;  %v2843_v56 = vld [vmem:[#allocation2] ss:$14 sps:$4 sm:$0xff]   ;;  %v2845_v57 = vld [vmem:[#allocation2 + $0x1c] ss:$14 sps:$4 sm:$0xff]  }
  0x69   :  { %1440 = vmatpush1.bf16.msra.mxu0 %v2788_v27  ;;  %1400 = vmatprep.subr.bf16.mxu1 %v2789_v28  ;;  %v2848_v59 = vld [vmem:[#allocation2 + $0x20] ss:$14 sps:$4 sm:$0xff]   ;;  %v109_v60 = vrot.slane %v2843_v56, %v3391_v53  ;;  %v123_v61 = vrot.slane %v2845_v57, %v3391_v53  ;;  %v2829_v7 = vld [vmem:[#allocation5 + $0x1a0] ss:$16 sps:$4 sm:$0xff]   ;;  %v2860_v27 = vld [vmem:[#allocation5 + $0x2c] ss:$16 sps:$4 sm:$0xff]  }
  0x6a   :  { %1441 = vmatprep.subr.bf16.mxu0 %v2791_v29  ;;  %v130_v1 = vrot.slane %v2848_v59, %v3391_v53  ;;  %v2825_v2 = vld [vmem:[#allocation5 + $0x1a4] ss:$16 sps:$4 sm:$0xff]   ;;  %v2830_v8 = vld [vmem:[#allocation5 + $0x3a0] ss:$16 sps:$4 sm:$0xff]   ;;  %v2858_v29 = vld [vmem:[#allocation5 + $0x28] ss:$16 sps:$4 sm:$0xff]  }
  0x6b   :  { %v132_v3 = vcombine.high %v109_v60, %v123_v61  ;;  %v2827_v4 = vld [vmem:[#allocation5 + $0x3a4] ss:$16 sps:$4 sm:$0xff]   ;;  %v2835_v12 = vld [vmem:[#allocation5 + $0x1c0] ss:$16 sps:$4 sm:$0xff]   ;;  %v131_v18 = vcombine.low %v109_v60, %v123_v61  ;;  %v2894_v59 = vld [vmem:[#allocation5 + $0xe8] ss:$16 sps:$4 sm:$0xff]  }
  0x6c   :  { %1401 = vmatpush1.bf16.msra.mxu1 %v2793_v30  ;;  %v134_v5 = vcombine.high %v116_v62, %v130_v1  ;;  %v2831_v10 = vld [vmem:[#allocation5 + $0x1c4] ss:$16 sps:$4 sm:$0xff]   ;;  %v2836_v13 = vld [vmem:[#allocation5 + $0x3c0] ss:$16 sps:$4 sm:$0xff]   ;;  %v133_v19 = vcombine.low %v116_v62, %v130_v1  ;;  %v2902_v61 = vld [vmem:[#allocation5 + $0x10c] ss:$16 sps:$4 sm:$0xff]  }
  0x6d   :  { %1442 = vmatpush1.bf16.msra.mxu0 %v2794_v31  ;;  %1402 = vmatprep.subr.bf16.mxu1 %v2795_v32  ;;  %v178_v6 = vpack.c.bf16 %v132_v3, %v132_v3  ;;  %v2833_v11 = vld [vmem:[#allocation5 + $0x3c4] ss:$16 sps:$4 sm:$0xff]   ;;  %v2841_v16 = vld [vmem:[#allocation5 + $0x1e0] ss:$16 sps:$4 sm:$0xff]   ;;  %v3400_v22 = vpack.c.bf16 %v131_v18, %v131_v18  ;;  %v2866_v31 = vld [vmem:[#allocation5 + $0x4c] ss:$16 sps:$4 sm:$0xff]  }
  0x6e   :  { %1443 = vmatprep.subr.bf16.mxu0 %v2797_v33  ;;  %v3397_v9 = vpack.c.bf16 %v134_v5, %v134_v5  ;;  %v2837_v14 = vld [vmem:[#allocation5 + $0x1e4] ss:$16 sps:$4 sm:$0xff]   ;;  %v2842_v17 = vld [vmem:[#allocation5 + $0x3e0] ss:$16 sps:$4 sm:$0xff]   ;;  %v3402_v25 = vpack.c.bf16 %v133_v19, %v133_v19  ;;  %v2864_v33 = vld [vmem:[#allocation5 + $0x48] ss:$16 sps:$4 sm:$0xff]  }
  0x6f   :  { %1418 = vmatprep.mubr.bf16.mxu1 %v178_v6  ;;  %v2839_v15 = vld [vmem:[#allocation5 + $0x3e4] ss:$16 sps:$4 sm:$0xff]   ;;  %v2849_v23 = vld [vmem:[#allocation5 + $0x400] ss:$16 sps:$4 sm:$0xff]   ;;  %v2900_v1 = vld [vmem:[#allocation5 + $0x108] ss:$16 sps:$4 sm:$0xff]  }
  0x70   :  { %1403 = vmatpush1.bf16.msra.mxu1 %v2799_v34  ;;  %1459 = vmatprep.mubr.bf16.mxu0 %v3397_v9  ;;  %v2851_v20 = vld [vmem:[#allocation5 + $0x404] ss:$16 sps:$4 sm:$0xff]   ;;  %v2855_v28 = vld [vmem:[#allocation5 + $0x420] ss:$16 sps:$4 sm:$0xff]   ;;  %v2908_v3 = vld [vmem:[#allocation5 + $0x12c] ss:$16 sps:$4 sm:$0xff]  }
  0x71   :  { %1444 = vmatpush1.bf16.msra.mxu0 %v2800_v35  ;;  %1404 = vmatprep.subr.bf16.mxu1 %v2801_v36  ;;  %v2857_v26 = vld [vmem:[#allocation5 + $0x424] ss:$16 sps:$4 sm:$0xff]   ;;  %v2861_v32 = vld [vmem:[#allocation5 + $0x440] ss:$16 sps:$4 sm:$0xff]   ;;  %v2872_v35 = vld [vmem:[#allocation5 + $0x6c] ss:$16 sps:$4 sm:$0xff]  }
  0x72   :  { %1445 = vmatprep.subr.bf16.mxu0 %v2803_v37  ;;  %v2863_v30 = vld [vmem:[#allocation5 + $0x444] ss:$16 sps:$4 sm:$0xff]   ;;  %v2867_v36 = vld [vmem:[#allocation5 + $0x460] ss:$16 sps:$4 sm:$0xff]   ;;  %v2870_v37 = vld [vmem:[#allocation5 + $0x68] ss:$16 sps:$4 sm:$0xff]  }
  0x73   :  { %v2869_v34 = vld [vmem:[#allocation5 + $0x464] ss:$16 sps:$4 sm:$0xff]   ;;  %v2873_v40 = vld [vmem:[#allocation5 + $0x480] ss:$16 sps:$4 sm:$0xff]   ;;  %v2906_v5 = vld [vmem:[#allocation5 + $0x128] ss:$16 sps:$4 sm:$0xff]  }
  0x74   :  { %1405 = vmatpush1.bf16.msra.mxu1 %v2805_v41  ;;  %v2875_v38 = vld [vmem:[#allocation5 + $0x484] ss:$16 sps:$4 sm:$0xff]   ;;  %v2876_v41 = vld [vmem:[#allocation5 + $0x88] ss:$16 sps:$4 sm:$0xff]   ;;  %v2891_v56 = vld [vmem:[#allocation5 + $0x4e0] ss:$16 sps:$4 sm:$0xff]  }
  0x75   :  { %1446 = vmatpush1.bf16.msra.mxu0 %v2806_v42  ;;  %1406 = vmatprep.subr.bf16.mxu1 %v2807_v43  ;;  %v2881_v42 = vld [vmem:[#allocation5 + $0x4a4] ss:$16 sps:$4 sm:$0xff]   ;;  %v2884_v43 = vld [vmem:[#allocation5 + $0xac] ss:$16 sps:$4 sm:$0xff]   ;;  %v2924_v18 = vld [vmem:[#allocation5 + $0x188] ss:$16 sps:$4 sm:$0xff]  }
  0x76   :  { %1447 = vmatprep.subr.bf16.mxu0 %v2809_v44  ;;  %v2879_v44 = vld [vmem:[#allocation5 + $0x4a0] ss:$16 sps:$4 sm:$0xff]   ;;  %v2899_v60 = vld [vmem:[#allocation5 + $0x504] ss:$16 sps:$4 sm:$0xff]  }
  0x77   :  { %v2929_v19 = vld [vmem:[#allocation5 + $0x5a4] ss:$16 sps:$4 sm:$0xff]  }
  0x78   :  { %1407 = vmatpush1.bf16.msra.mxu1 %v2811_v47  ;;  %v2887_v47 = vld [vmem:[#allocation5 + $0x4c4] ss:$16 sps:$4 sm:$0xff]  }
  0x79   :  { %1448 = vmatpush1.bf16.msra.mxu0 %v2812_v48  ;;  %1408 = vmatprep.subr.bf16.mxu1 %v2813_v49  ;;  %v2890_v48 = vld [vmem:[#allocation5 + $0xcc] ss:$16 sps:$4 sm:$0xff]   ;;  %v2885_v49 = vld [vmem:[#allocation5 + $0x4c0] ss:$16 sps:$4 sm:$0xff]  }
  0x7a   :  { %1449 = vmatprep.subr.bf16.mxu0 %v2815_v50  ;;  %v2888_v50 = vld [vmem:[#allocation5 + $0xc8] ss:$16 sps:$4 sm:$0xff]  }
  0x7c   :  { %1409 = vmatpush1.bf16.msra.mxu1 %v2817_v51  ;;  %v2893_v51 = vld [vmem:[#allocation5 + $0x4e4] ss:$16 sps:$4 sm:$0xff]  }
  0x7d   :  { %1450 = vmatpush1.bf16.msra.mxu0 %v2818_v52  ;;  %1410 = vmatprep.subr.bf16.mxu1 %v2819_v54  ;;  %v2896_v52 = vld [vmem:[#allocation5 + $0xec] ss:$16 sps:$4 sm:$0xff]  }
  0x7e   :  { %1451 = vmatprep.subr.bf16.mxu0 %v2821_v55  ;;  %v2945_v54 = vld [vmem:[#allocation2 + $0x8] ss:$14 sps:$4 sm:$0xff]   ;;  %v2948_v55 = vld [vmem:[#allocation2 + $0x24] ss:$14 sps:$4 sm:$0xff]  }
  0x7f   :  { %v3407_v57 = vrot.slane %v2945_v54, %v3391_v53  ;;  %v3410_v58 = vrot.slane %v2948_v55, %v3391_v53  ;;  %v2966_v55 = vld [vmem:[#allocation5 + $0x288] ss:$16 sps:$4 sm:$0xff]  }
  0x80   :  { %1411 = vmatpush1.bf16.msra.mxu1 %v2823_v63  ;;  %v2897_v63 = vld [vmem:[#allocation5 + $0x500] ss:$16 sps:$4 sm:$0xff]  }
  0x81   :  { %1452 = vmatpush1.bf16.msra.mxu0 %v2824_v0  ;;  %1412 = vmatprep.subr.bf16.mxu1 %v2825_v2  ;;  %v168_v62 = vcombine.high %v3407_v57, %v3410_v58  ;;  %v2905_v2 = vld [vmem:[#allocation5 + $0x524] ss:$16 sps:$4 sm:$0xff]  }
  0x82   :  { %1453 = vmatprep.subr.bf16.mxu0 %v2827_v4  ;;  %v2903_v4 = vld [vmem:[#allocation5 + $0x520] ss:$16 sps:$4 sm:$0xff]  }
  0x83   :  { %v3414_v0 = vpack.c.bf16 %v168_v62, %v168_v62  ;;  %v3058_v62 = vld [vmem:[#allocation7 + $0x14] ss:$8 sps:$4 sm:$0xff]  }
  0x84   :  { %1413 = vmatpush1.bf16.msra.mxu1 %v2829_v7  ;;  %v2914_v7 = vld [vmem:[#allocation5 + $0x14c] ss:$16 sps:$4 sm:$0xff]  }
  0x85   :  { %1454 = vmatpush1.bf16.msra.mxu0 %v2830_v8  ;;  %1414 = vmatprep.subr.bf16.mxu1 %v2831_v10  ;;  %v2909_v8 = vld [vmem:[#allocation5 + $0x540] ss:$16 sps:$4 sm:$0xff]   ;;  %v2912_v10 = vld [vmem:[#allocation5 + $0x148] ss:$16 sps:$4 sm:$0xff]  }
  0x86   :  { %1455 = vmatprep.subr.bf16.mxu0 %v2833_v11  ;;  %v2917_v11 = vld [vmem:[#allocation5 + $0x564] ss:$16 sps:$4 sm:$0xff]  }
  0x88   :  { %1415 = vmatpush1.bf16.msra.mxu1 %v2835_v12  ;;  %v2920_v12 = vld [vmem:[#allocation5 + $0x16c] ss:$16 sps:$4 sm:$0xff]  }
  0x89   :  { %1456 = vmatpush1.bf16.msra.mxu0 %v2836_v13  ;;  %1416 = vmatprep.subr.bf16.mxu1 %v2837_v14  ;;  %v2915_v13 = vld [vmem:[#allocation5 + $0x560] ss:$16 sps:$4 sm:$0xff]   ;;  %v2918_v14 = vld [vmem:[#allocation5 + $0x168] ss:$16 sps:$4 sm:$0xff]  }
  0x8a   :  { %1457 = vmatprep.subr.bf16.mxu0 %v2839_v15  ;;  %v2923_v15 = vld [vmem:[#allocation5 + $0x584] ss:$16 sps:$4 sm:$0xff]  }
  0x8c   :  { %1417 = vmatpush1.bf16.msra.mxu1 %v2841_v16  ;;  %v2926_v16 = vld [vmem:[#allocation5 + $0x18c] ss:$16 sps:$4 sm:$0xff]  }
  0x8d   :  { %1458 = vmatpush1.bf16.msra.mxu0 %v2842_v17  ;;  %1550 = vmatprep.subr.bf16.mxu1 %v2854_v21  ;;  %v2921_v17 = vld [vmem:[#allocation5 + $0x580] ss:$16 sps:$4 sm:$0xff]  }
  0x8e   :  { %1468 = vmatprep.subr.bf16.mxu0 %v2851_v20  ;;  %v2932_v20 = vld [vmem:[#allocation5 + $0x1ac] ss:$16 sps:$4 sm:$0xff]   ;;  %v2927_v21 = vld [vmem:[#allocation5 + $0x5a0] ss:$16 sps:$4 sm:$0xff]  }
  0x8f   :  { %1419 = vmatmul.mubr.bf16.vlgmr.msra.gmra.mrb[0].mxu1 %v3400_v22 }
  0x90   :  { %1460 = vmatmul.mubr.bf16.vlgmr.msra.gmra.mrb[0].mxu0 %v3402_v25  ;;  %1551 = vmatpush1.bf16.msra.mxu1 %v2852_v24  ;;  %v2935_v24 = vld [vmem:[#allocation5 + $0x5c4] ss:$16 sps:$4 sm:$0xff]  }
  0x91   :  { %1469 = vmatpush1.bf16.msra.mxu0 %v2849_v23  ;;  %1552 = vmatprep.subr.bf16.mxu1 %v2860_v27  ;;  %v2930_v23 = vld [vmem:[#allocation5 + $0x1a8] ss:$16 sps:$4 sm:$0xff]   ;;  %v2933_v27 = vld [vmem:[#allocation5 + $0x5c0] ss:$16 sps:$4 sm:$0xff]  }
  0x92   :  { %1470 = vmatprep.subr.bf16.mxu0 %v2857_v26  ;;  %1582 = vmatprep.mubr.bf16.mxu1 %v178_v6  ;;  %v2911_v6 = vld [vmem:[#allocation5 + $0x544] ss:$16 sps:$4 sm:$0xff]   ;;  %v2938_v26 = vld [vmem:[#allocation5 + $0x1cc] ss:$16 sps:$4 sm:$0xff]  }
  0x93   :  { %1500 = vmatprep.mubr.bf16.mxu0 %v3414_v0 }
  0x94   :  { %1553 = vmatpush1.bf16.msra.mxu1 %v2858_v29  ;;  %v2941_v29 = vld [vmem:[#allocation5 + $0x5e4] ss:$16 sps:$4 sm:$0xff]  }
  0x95   :  { %1471 = vmatpush1.bf16.msra.mxu0 %v2855_v28  ;;  %1554 = vmatprep.subr.bf16.mxu1 %v2866_v31  ;;  %v2936_v28 = vld [vmem:[#allocation5 + $0x1c8] ss:$16 sps:$4 sm:$0xff]   ;;  %v2939_v31 = vld [vmem:[#allocation5 + $0x5e0] ss:$16 sps:$4 sm:$0xff]  }
  0x96   :  { %1472 = vmatprep.subr.bf16.mxu0 %v2863_v30  ;;  %v2944_v30 = vld [vmem:[#allocation5 + $0x1ec] ss:$16 sps:$4 sm:$0xff]  }
  0x98   :  { %1555 = vmatpush1.bf16.msra.mxu1 %v2864_v33  ;;  %v2942_v33 = vld [vmem:[#allocation5 + $0x1e8] ss:$16 sps:$4 sm:$0xff]  }
  0x99   :  { %1473 = vmatpush1.bf16.msra.mxu0 %v2861_v32  ;;  %1556 = vmatprep.subr.bf16.mxu1 %v2872_v35  ;;  %v167_v32 = vcombine.low %v3407_v57, %v3410_v58  ;;  %v2953_v35 = vld [vmem:[#allocation5 + $0x20c] ss:$16 sps:$4 sm:$0xff]   ;;  %v2972_v58 = vld [vmem:[#allocation5 + $0x2c8] ss:$16 sps:$4 sm:$0xff]  }
  0x9a   :  { %1474 = vmatprep.subr.bf16.mxu0 %v2869_v34  ;;  %v2947_v34 = vld [vmem:[#allocation2 + $0xc] ss:$14 sps:$4 sm:$0x33]   ;;  %v2974_v57 = vld [vmem:[#allocation5 + $0x2cc] ss:$16 sps:$4 sm:$0xff]  }
  0x9c   :  { %1557 = vmatpush1.bf16.msra.mxu1 %v2870_v37  ;;  %v2950_v37 = vld [vmem:[#allocation2 + $0x28] ss:$14 sps:$4 sm:$0x33]  }
  0x9d   :  { %1475 = vmatpush1.bf16.msra.mxu0 %v2867_v36  ;;  %1558 = vmatprep.subr.bf16.mxu1 %v2878_v39  ;;  %v2959_v36 = vld [vmem:[#allocation5 + $0x604] ss:$16 sps:$4 sm:$0xff]   ;;  %v2951_v39 = vld [vmem:[#allocation5 + $0x208] ss:$16 sps:$4 sm:$0xff]  }
  0x9e   :  { %1476 = vmatprep.subr.bf16.mxu0 %v2875_v38  ;;  %v3419_v38 = vpack.c.bf16 %v167_v32, %v167_v32  ;;  %v3077_v32 = vld [vmem:[#allocation7 + $0x80] ss:$8 sps:$4 sm:$0xff]  }
  0xa0   :  { %1559 = vmatpush1.bf16.msra.mxu1 %v2876_v41  ;;  %v2956_v41 = vld [vmem:[#allocation5 + $0x22c] ss:$16 sps:$4 sm:$0xff]  }
  0xa1   :  { %1477 = vmatpush1.bf16.msra.mxu0 %v2873_v40  ;;  %1560 = vmatprep.subr.bf16.mxu1 %v2884_v43  ;;  %v2957_v40 = vld [vmem:[#allocation5 + $0x600] ss:$16 sps:$4 sm:$0xff]   ;;  %v166_v43 = vrot.slane %v2950_v37, %v3391_v53  ;;  %v3004_v37 = vld [vmem:[#allocation5 + $0x40c] ss:$16 sps:$4 sm:$0xff]  }
  0xa2   :  { %1478 = vmatprep.subr.bf16.mxu0 %v2881_v42  ;;  %v152_v42 = vrot.slane %v2947_v34, %v3391_v53  ;;  %v2963_v53 = vld [vmem:[#allocation5 + $0x268] ss:$16 sps:$4 sm:$0xff]   ;;  %v3082_v34 = vld [vmem:[#allocation7 + $0x94] ss:$8 sps:$4 sm:$0xff]  }
  0xa4   :  { %1561 = vmatpush1.bf16.msra.mxu1 %v2882_v45  ;;  %v2962_v45 = vld [vmem:[#allocation5 + $0x24c] ss:$16 sps:$4 sm:$0xff]  }
  0xa5   :  { %1479 = vmatpush1.bf16.msra.mxu0 %v2879_v44  ;;  %1562 = vmatprep.subr.bf16.mxu1 %v2890_v48  ;;  %v2954_v44 = vld [vmem:[#allocation5 + $0x228] ss:$16 sps:$4 sm:$0xff]   ;;  %v3049_v48 = vld [vmem:[#allocation5 + $0x60c] ss:$16 sps:$4 sm:$0xff]  }
  0xa6   :  { %1480 = vmatprep.subr.bf16.mxu0 %v2887_v47  ;;  %v3296_v47 = vmov 0  }
  0xa8   :  { %1563 = vmatpush1.bf16.msra.mxu1 %v2888_v50  ;;  %v2960_v50 = vld [vmem:[#allocation5 + $0x248] ss:$16 sps:$4 sm:$0xff]  }
  0xa9   :  { %1481 = vmatpush1.bf16.msra.mxu0 %v2885_v49  ;;  %1564 = vmatprep.subr.bf16.mxu1 %v2896_v52  ;;  %v169_v49 = vcombine.low %v152_v42, %v166_v43  ;;  %v3047_v52 = vld [vmem:[#allocation5 + $0x608] ss:$16 sps:$4 sm:$0xff]   ;;  %v3088_v43 = vld [vmem:[#allocation7 + $0xb4] ss:$8 sps:$4 sm:$0xff]  }
  0xaa   :  { %1482 = vmatprep.subr.bf16.mxu0 %v2893_v51  ;;  %v2965_v51 = vld [vmem:[#allocation5 + $0x26c] ss:$16 sps:$4 sm:$0xff]   ;;  %v3083_v42 = vld [vmem:[#allocation7 + $0xa0] ss:$8 sps:$4 sm:$0xff]  }
  0xab   :  { %v183_v54 = vpack.c.bf16 %v169_v49, %v169_v49  ;;  %v3008_v49 = vld [vmem:[#allocation5 + $0x448] ss:$16 sps:$4 sm:$0xff]  }
  0xac   :  { %1565 = vmatpush1.bf16.msra.mxu1 %v2894_v59  ;;  %v2977_v59 = vld [vmem:[#allocation5 + $0x2ec] ss:$16 sps:$4 sm:$0xff]  }
  0xad   :  { %1483 = vmatpush1.bf16.msra.mxu0 %v2891_v56  ;;  %1566 = vmatprep.subr.bf16.mxu1 %v2902_v61  ;;  %v2971_v56 = vld [vmem:[#allocation5 + $0x2ac] ss:$16 sps:$4 sm:$0xff]  }
  0xae   :  { %1484 = vmatprep.subr.bf16.mxu0 %v2899_v60  ;;  %v3053_v60 = vld [vmem:[#allocation7] ss:$8 sps:$4 sm:$0xff]   ;;  %v3055_v61 = vld [vmem:[#allocation7 + $0x4] ss:$8 sps:$4 sm:$0xff]  }
  0xb0   :  { %1567 = vmatpush1.bf16.msra.mxu1 %v2900_v1  ;;  %v3056_v1 = vld [vmem:[#allocation7 + $0x10] ss:$8 sps:$4 sm:$0xff]  }
  0xb1   :  { %1485 = vmatpush1.bf16.msra.mxu0 %v2897_v63  ;;  %1568 = vmatprep.subr.bf16.mxu1 %v2908_v3  ;;  %v2975_v63 = vld [vmem:[#allocation5 + $0x2e8] ss:$16 sps:$4 sm:$0xff]   ;;  %v3061_v3 = vld [vmem:[#allocation7 + $0x24] ss:$8 sps:$4 sm:$0xff]  }
  0xb2   :  { %1486 = vmatprep.subr.bf16.mxu0 %v2905_v2  ;;  %v2980_v2 = vld [vmem:[#allocation5 + $0x30c] ss:$16 sps:$4 sm:$0xff]  }
  0xb4   :  { %1569 = vmatpush1.bf16.msra.mxu1 %v2906_v5  ;;  %v3059_v5 = vld [vmem:[#allocation7 + $0x20] ss:$8 sps:$4 sm:$0xff]  }
  0xb5   :  { %1487 = vmatpush1.bf16.msra.mxu0 %v2903_v4  ;;  %1570 = vmatprep.subr.bf16.mxu1 %v2914_v7  ;;  %v2978_v4 = vld [vmem:[#allocation5 + $0x308] ss:$16 sps:$4 sm:$0xff]   ;;  %v3064_v7 = vld [vmem:[#allocation7 + $0x34] ss:$8 sps:$4 sm:$0xff]  }
  0xb6   :  { %1488 = vmatprep.subr.bf16.mxu0 %v2911_v6  ;;  %v2983_v6 = vld [vmem:[#allocation5 + $0x32c] ss:$16 sps:$4 sm:$0xff]  }
  0xb8   :  { %1571 = vmatpush1.bf16.msra.mxu1 %v2912_v10  ;;  %v3062_v10 = vld [vmem:[#allocation7 + $0x30] ss:$8 sps:$4 sm:$0xff]  }
  0xb9   :  { %1489 = vmatpush1.bf16.msra.mxu0 %v2909_v8  ;;  %1572 = vmatprep.subr.bf16.mxu1 %v2920_v12  ;;  %v2981_v8 = vld [vmem:[#allocation5 + $0x328] ss:$16 sps:$4 sm:$0xff]   ;;  %v3067_v12 = vld [vmem:[#allocation7 + $0x44] ss:$8 sps:$4 sm:$0xff]  }
  0xba   :  { %1490 = vmatprep.subr.bf16.mxu0 %v2917_v11  ;;  %v2986_v11 = vld [vmem:[#allocation5 + $0x34c] ss:$16 sps:$4 sm:$0xff]  }
  0xbc   :  { %1573 = vmatpush1.bf16.msra.mxu1 %v2918_v14  ;;  %v3065_v14 = vld [vmem:[#allocation7 + $0x40] ss:$8 sps:$4 sm:$0xff]  }
  0xbd   :  { %1491 = vmatpush1.bf16.msra.mxu0 %v2915_v13  ;;  %1574 = vmatprep.subr.bf16.mxu1 %v2926_v16  ;;  %v2984_v13 = vld [vmem:[#allocation5 + $0x348] ss:$16 sps:$4 sm:$0xff]   ;;  %v3070_v16 = vld [vmem:[#allocation7 + $0x54] ss:$8 sps:$4 sm:$0xff]  }
  0xbe   :  { %1492 = vmatprep.subr.bf16.mxu0 %v2923_v15  ;;  %v2989_v15 = vld [vmem:[#allocation5 + $0x36c] ss:$16 sps:$4 sm:$0xff]  }
  0xc0   :  { %1575 = vmatpush1.bf16.msra.mxu1 %v2924_v18  ;;  %v3068_v18 = vld [vmem:[#allocation7 + $0x50] ss:$8 sps:$4 sm:$0xff]  }
  0xc1   :  { %1493 = vmatpush1.bf16.msra.mxu0 %v2921_v17  ;;  %1576 = vmatprep.subr.bf16.mxu1 %v2932_v20  ;;  %v2987_v17 = vld [vmem:[#allocation5 + $0x368] ss:$16 sps:$4 sm:$0xff]   ;;  %v3073_v20 = vld [vmem:[#allocation7 + $0x64] ss:$8 sps:$4 sm:$0xff]  }
  0xc2   :  { %1494 = vmatprep.subr.bf16.mxu0 %v2929_v19  ;;  %v2992_v19 = vld [vmem:[#allocation5 + $0x38c] ss:$16 sps:$4 sm:$0xff]  }
  0xc4   :  { %1577 = vmatpush1.bf16.msra.mxu1 %v2930_v23  ;;  %v3071_v23 = vld [vmem:[#allocation7 + $0x60] ss:$8 sps:$4 sm:$0xff]  }
  0xc5   :  { %1495 = vmatpush1.bf16.msra.mxu0 %v2927_v21  ;;  %1578 = vmatprep.subr.bf16.mxu1 %v2938_v26  ;;  %v2990_v21 = vld [vmem:[#allocation5 + $0x388] ss:$16 sps:$4 sm:$0xff]   ;;  %v3076_v26 = vld [vmem:[#allocation7 + $0x74] ss:$8 sps:$4 sm:$0xff]  }
  0xc6   :  { %1496 = vmatprep.subr.bf16.mxu0 %v2935_v24  ;;  %v2995_v24 = vld [vmem:[#allocation5 + $0x3ac] ss:$16 sps:$4 sm:$0xff]  }
  0xc8   :  { %1579 = vmatpush1.bf16.msra.mxu1 %v2936_v28  ;;  %v3074_v28 = vld [vmem:[#allocation7 + $0x70] ss:$8 sps:$4 sm:$0xff]  }
  0xc9   :  { %1497 = vmatpush1.bf16.msra.mxu0 %v2933_v27  ;;  %1580 = vmatprep.subr.bf16.mxu1 %v2944_v30  ;;  %v2993_v27 = vld [vmem:[#allocation5 + $0x3a8] ss:$16 sps:$4 sm:$0xff]   ;;  %v3079_v30 = vld [vmem:[#allocation7 + $0x84] ss:$8 sps:$4 sm:$0xff]  }
  0xca   :  { %1498 = vmatprep.subr.bf16.mxu0 %v2941_v29  ;;  %v2998_v29 = vld [vmem:[#allocation5 + $0x3cc] ss:$16 sps:$4 sm:$0xff]  }
  0xcc   :  { %1581 = vmatpush1.bf16.msra.mxu1 %v2942_v33  ;;  %v3001_v33 = vld [vmem:[#allocation5 + $0x3ec] ss:$16 sps:$4 sm:$0xff]  }
  0xcd   :  { %1499 = vmatpush1.bf16.msra.mxu0 %v2939_v31  ;;  %1591 = vmatprep.subr.bf16.mxu1 %v2953_v35  ;;  %v2996_v31 = vld [vmem:[#allocation5 + $0x3c8] ss:$16 sps:$4 sm:$0xff]  }
  0xce   :  { %1509 = vmatprep.subr.bf16.mxu0 %v2959_v36  ;;  %v2999_v35 = vld [vmem:[#allocation5 + $0x3e8] ss:$16 sps:$4 sm:$0xff]  }
  0xcf   :  { %1583 = vmatmul.mubr.bf16.vlgmr.msra.gmra.mrb[4].mxu1 %v3400_v22  ;;  %v2968_v22 = vld [vmem:[#allocation5 + $0x28c] ss:$16 sps:$4 sm:$0xff]   ;;  %v3080_v36 = vld [vmem:[#allocation7 + $0x90] ss:$8 sps:$4 sm:$0xff]  }
  0xd0   :  { %1501 = vmatmul.mubr.bf16.vlgmr.msra.gmra.mrb[0].mxu0 %v3419_v38  ;;  %1592 = vmatpush1.bf16.msra.mxu1 %v2951_v39  ;;  %v3085_v39 = vld [vmem:[#allocation7 + $0xa4] ss:$8 sps:$4 sm:$0xff]  }
  0xd1   :  { %1510 = vmatpush1.bf16.msra.mxu0 %v2957_v40  ;;  %1593 = vmatprep.subr.bf16.mxu1 %v2956_v41  ;;  %v3002_v40 = vld [vmem:[#allocation5 + $0x408] ss:$16 sps:$4 sm:$0xff]   ;;  %v3007_v41 = vld [vmem:[#allocation5 + $0x42c] ss:$16 sps:$4 sm:$0xff]  }
  0xd2   :  { %1541 = vmatprep.mubr.bf16.mxu0 %v3296_v47  ;;  %1623 = vmatprep.mubr.bf16.mxu1 %v3397_v9  ;;  %v2969_v9 = vld [vmem:[#allocation5 + $0x2a8] ss:$16 sps:$4 sm:$0xff]  }
  0xd3   :  { %1673 = vmatprep.subr.bf16.mxu0 %v3049_v48  ;;  %v3091_v48 = vld [vmem:[#allocation7 + $0xc4] ss:$8 sps:$4 sm:$0xff]  }
  0xd4   :  { %1594 = vmatpush1.bf16.msra.mxu1 %v2954_v44  ;;  %v3005_v44 = vld [vmem:[#allocation5 + $0x428] ss:$16 sps:$4 sm:$0xff]  }
  0xd5   :  { %1595 = vmatprep.subr.bf16.mxu1 %v2962_v45  ;;  %v3010_v45 = vld [vmem:[#allocation5 + $0x44c] ss:$16 sps:$4 sm:$0xff]  }
  0xd8   :  { %1596 = vmatpush1.bf16.msra.mxu1 %v2960_v50  ;;  %v3013_v50 = vld [vmem:[#allocation5 + $0x46c] ss:$16 sps:$4 sm:$0xff]  }
  0xd9   :  { %1597 = vmatprep.subr.bf16.mxu1 %v2965_v51  ;;  %v3089_v51 = vld [vmem:[#allocation7 + $0xc0] ss:$8 sps:$4 sm:$0xff]  }
  0xdc   :  { %2595 = vmatmul.mubr.msk.bf16.vlgmr.msra.gmra.mrb[0].mxu0 %vm1382_vm0, %v183_v54  ;;  %1598 = vmatpush1.bf16.msra.mxu1 %v2963_v53  ;;  %v3094_v53 = vld [vmem:[#allocation7 + $0xd4] ss:$8 sps:$4 sm:$0xff]  }
  0xdd   :  { %1674 = vmatpush1.bf16.msra.mxu0 %v3047_v52  ;;  %1599 = vmatprep.subr.bf16.mxu1 %v2968_v22  ;;  %v3016_v52 = vld [vmem:[#allocation5 + $0x48c] ss:$16 sps:$4 sm:$0xff]  }
  0xde   :  { %1705 = vmatprep.mubr.bf16.mxu0 %v3296_v47  ;;  %2118 = vmatprep.subr.bf16.mxu0 %v3055_v61  ;;  %v3086_v47 = vld [vmem:[#allocation7 + $0xb0] ss:$8 sps:$4 sm:$0xff]   ;;  %v3019_v22 = vld [vmem:[#allocation5 + $0x4ac] ss:$16 sps:$4 sm:$0xff]  }
  0xdf   :  { %v3031_v61 = vld [vmem:[#allocation5 + $0x52c] ss:$16 sps:$4 sm:$0xff]  }
  0xe0   :  { %1600 = vmatpush1.bf16.msra.mxu1 %v2966_v55  ;;  %v3017_v55 = vld [vmem:[#allocation5 + $0x4a8] ss:$16 sps:$4 sm:$0xff]  }
  0xe1   :  { %1601 = vmatprep.subr.bf16.mxu1 %v2971_v56  ;;  %v3022_v56 = vld [vmem:[#allocation5 + $0x4cc] ss:$16 sps:$4 sm:$0xff]  }
  0xe4   :  { %2596 = vmatmul.mubr.msk.bf16.vlgmr.msra.gmra.mrb[4].mxu0 %vm1382_vm0, %v183_v54  ;;  %1602 = vmatpush1.bf16.msra.mxu1 %v2969_v9  ;;  %v3014_v54 = vld [vmem:[#allocation5 + $0x488] ss:$16 sps:$4 sm:$0xff]  }
  0xe5   :  { %1603 = vmatprep.subr.bf16.mxu1 %v2974_v57  ;;  %2119 = vmatpush1.bf16.msra.mxu0 %v3053_v60  ;;  %v3020_v9 = vld [vmem:[#allocation5 + $0x4c8] ss:$16 sps:$4 sm:$0xff]   ;;  %v3025_v57 = vld [vmem:[#allocation5 + $0x4ec] ss:$16 sps:$4 sm:$0xff]  }
  0xe6   :  { %2120 = vmatprep.subr.bf16.mxu0 %v3058_v62  ;;  %v3026_v60 = vld [vmem:[#allocation5 + $0x508] ss:$16 sps:$4 sm:$0xff]   ;;  %v3097_v62 = vld [vmem:[#allocation7 + $0xe4] ss:$8 sps:$4 sm:$0xff]  }
  0xe8   :  { %1604 = vmatpush1.bf16.msra.mxu1 %v2972_v58  ;;  %v3023_v58 = vld [vmem:[#allocation5 + $0x4e8] ss:$16 sps:$4 sm:$0xff]  }
  0xe9   :  { %1605 = vmatprep.subr.bf16.mxu1 %v2977_v59  ;;  %2121 = vmatpush1.bf16.msra.mxu0 %v3056_v1  ;;  %v3028_v59 = vld [vmem:[#allocation5 + $0x50c] ss:$16 sps:$4 sm:$0xff]   ;;  %v3029_v1 = vld [vmem:[#allocation5 + $0x528] ss:$16 sps:$4 sm:$0xff]  }
  0xea   :  { %2122 = vmatprep.subr.bf16.mxu0 %v3061_v3  ;;  %v3100_v3 = vld [vmem:[#allocation7 + $0xf4] ss:$8 sps:$4 sm:$0xff]  }
  0xec   :  { %1606 = vmatpush1.bf16.msra.mxu1 %v2975_v63  ;;  %v3095_v63 = vld [vmem:[#allocation7 + $0xe0] ss:$8 sps:$4 sm:$0xff]  }
  0xed   :  { %1607 = vmatprep.subr.bf16.mxu1 %v2980_v2  ;;  %2123 = vmatpush1.bf16.msra.mxu0 %v3059_v5  ;;  %v3034_v2 = vld [vmem:[#allocation5 + $0x54c] ss:$16 sps:$4 sm:$0xff]   ;;  %v3032_v5 = vld [vmem:[#allocation5 + $0x548] ss:$16 sps:$4 sm:$0xff]  }
  0xee   :  { %2124 = vmatprep.subr.bf16.mxu0 %v3064_v7  ;;  %v3103_v7 = vld [vmem:[#allocation7 + $0x104] ss:$8 sps:$4 sm:$0xff]  }
  0xf0   :  { %1608 = vmatpush1.bf16.msra.mxu1 %v2978_v4  ;;  %v3098_v4 = vld [vmem:[#allocation7 + $0xf0] ss:$8 sps:$4 sm:$0xff]  }
  0xf1   :  { %1609 = vmatprep.subr.bf16.mxu1 %v2983_v6  ;;  %2125 = vmatpush1.bf16.msra.mxu0 %v3062_v10  ;;  %v3037_v6 = vld [vmem:[#allocation5 + $0x56c] ss:$16 sps:$4 sm:$0xff]  }
  0xf2   :  { %2126 = vmatprep.subr.bf16.mxu0 %v3067_v12  ;;  %v3040_v10 = vld [vmem:[#allocation5 + $0x58c] ss:$16 sps:$4 sm:$0xff]  }
  0xf3   :  { %v3043_v12 = vld [vmem:[#allocation5 + $0x5ac] ss:$16 sps:$4 sm:$0xff]  }
  0xf4   :  { %1610 = vmatpush1.bf16.msra.mxu1 %v2981_v8  ;;  %v3035_v8 = vld [vmem:[#allocation5 + $0x568] ss:$16 sps:$4 sm:$0xff]  }
  0xf5   :  { %1611 = vmatprep.subr.bf16.mxu1 %v2986_v11  ;;  %2127 = vmatpush1.bf16.msra.mxu0 %v3065_v14  ;;  %v3038_v11 = vld [vmem:[#allocation5 + $0x588] ss:$16 sps:$4 sm:$0xff]   ;;  %v3046_v14 = vld [vmem:[#allocation5 + $0x5cc] ss:$16 sps:$4 sm:$0xff]  }
  0xf6   :  { %2128 = vmatprep.subr.bf16.mxu0 %v3070_v16  ;;  %v3052_v16 = vld [vmem:[#allocation5 + $0x5ec] ss:$16 sps:$4 sm:$0xff]  }
  0xf8   :  { %1612 = vmatpush1.bf16.msra.mxu1 %v2984_v13  ;;  %v3041_v13 = vld [vmem:[#allocation5 + $0x5a8] ss:$16 sps:$4 sm:$0xff]  }
  0xf9   :  { %1613 = vmatprep.subr.bf16.mxu1 %v2989_v15  ;;  %2129 = vmatpush1.bf16.msra.mxu0 %v3068_v18  ;;  %v3044_v15 = vld [vmem:[#allocation5 + $0x5c8] ss:$16 sps:$4 sm:$0xff]  }
  0xfa   :  { %2130 = vmatprep.subr.bf16.mxu0 %v3073_v20 }
  0xfc   :  { %1614 = vmatpush1.bf16.msra.mxu1 %v2987_v17  ;;  %v3050_v17 = vld [vmem:[#allocation5 + $0x5e8] ss:$16 sps:$4 sm:$0xff]  }
  0xfd   :  { %1615 = vmatprep.subr.bf16.mxu1 %v2992_v19  ;;  %2131 = vmatpush1.bf16.msra.mxu0 %v3071_v23  ;;  %v384_v23 = vsub.s32 0, %v3388_v46 }
  0xfe   :  { %2132 = vmatprep.subr.bf16.mxu0 %v3076_v26  ;;  %v388_v26 = vsub.s32 1, %v3388_v46 }
 0x100   :  { %1616 = vmatpush1.bf16.msra.mxu1 %v2990_v21 }
 0x101   :  { %1617 = vmatprep.subr.bf16.mxu1 %v2995_v24  ;;  %2133 = vmatpush1.bf16.msra.mxu0 %v3074_v28  ;;  %v3433_v24 = vld [vmem:[%s3476_s2] sm:$0xf] }
 0x102   :  { %2134 = vmatprep.subr.bf16.mxu0 %v3079_v30  ;;  %v3150_v30 = vld [vmem:[#allocation8] sm:$0xff]  }
 0x104   :  { %1618 = vmatpush1.bf16.msra.mxu1 %v2993_v27  ;;  %v385_v27 = vrot.slane %v3433_v24, %v384_v23 }
 0x105   :  { %1619 = vmatprep.subr.bf16.mxu1 %v2998_v29  ;;  %2135 = vmatpush1.bf16.msra.mxu0 %v3077_v32  ;;  %v3149_v29 = vld [vmem:[#allocation8 + $0x40] sm:$0xff]  }
 0x106   :  { %2136 = vmatprep.subr.bf16.mxu0 %v3082_v34 }
 0x108   :  { %1620 = vmatpush1.bf16.msra.mxu1 %v2996_v31  ;;  %v3151_v31 = vld [vmem:[#allocation8 + $0x48] sm:$0xff]  }
 0x109   :  { %1621 = vmatprep.subr.bf16.mxu1 %v3001_v33  ;;  %2137 = vmatpush1.bf16.msra.mxu0 %v3080_v36 }
 0x10a   :  { %2138 = vmatprep.subr.bf16.mxu0 %v3085_v39  ;;  %v3152_v39 = vld [vmem:[#allocation8 + $0x8] sm:$0xff]  }
 0x10c   :  { %1622 = vmatpush1.bf16.msra.mxu1 %v2999_v35 }
 0x10d   :  { %1632 = vmatprep.subr.bf16.mxu1 %v3004_v37  ;;  %2139 = vmatpush1.bf16.msra.mxu0 %v3083_v42  ;;  %v3153_v42 = vld [vmem:[#allocation8 + $0x50] sm:$0xff]  }
 0x10e   :  { %2140 = vmatprep.subr.bf16.mxu0 %v3088_v43 }
 0x10f   :  { %1624 = vmatmul.mubr.bf16.vlgmr.msra.gmra.mrb[4].mxu1 %v3402_v25  ;;  %v3011_v25 = vld [vmem:[#allocation5 + $0x468] ss:$16 sps:$4 sm:$0xff]  }
 0x110   :  { %1633 = vmatpush1.bf16.msra.mxu1 %v3002_v40  ;;  %1664 = vmatprep.mubr.bf16.mxu1 %v3414_v0  ;;  %v3092_v0 = vld [vmem:[#allocation7 + $0xd0] ss:$8 sps:$4 sm:$0xff]  }
 0x111   :  { %1634 = vmatprep.subr.bf16.mxu1 %v3007_v41  ;;  %2141 = vmatpush1.bf16.msra.mxu0 %v3086_v47  ;;  %v3154_v47 = vld [vmem:[#allocation8 + $0x10] sm:$0xff]  }
 0x112   :  { %2142 = vmatprep.subr.bf16.mxu0 %v3091_v48 }
 0x114   :  { %1635 = vmatpush1.bf16.msra.mxu1 %v3005_v44 }
 0x115   :  { %1636 = vmatprep.subr.bf16.mxu1 %v3010_v45  ;;  %2143 = vmatpush1.bf16.msra.mxu0 %v3089_v51  ;;  %v3101_v45 = vld [vmem:[#allocation7 + $0x100] ss:$8 sps:$4 sm:$0xff]  }
 0x116   :  { %2144 = vmatprep.subr.bf16.mxu0 %v3094_v53 }
 0x118   :  { %1637 = vmatpush1.bf16.msra.mxu1 %v3008_v49  ;;  %v3106_v49 = vld [vmem:[#allocation7 + $0x114] ss:$8 sps:$4 sm:$0xff]  }
 0x119   :  { %1638 = vmatprep.subr.bf16.mxu1 %v3013_v50  ;;  %2145 = vmatpush1.bf16.msra.mxu0 %v3092_v0  ;;  %v3155_v50 = vld [vmem:[#allocation8 + $0x58] sm:$0xff]  }
 0x11a   :  { %2146 = vmatprep.subr.bf16.mxu0 %v3097_v62  ;;  %v3156_v0 = vld [vmem:[#allocation8 + $0x18] sm:$0xff]   ;;  %v3113_v62 = vld [vmem:[#allocation7 + $0x140] ss:$8 sps:$4 sm:$0xff]  }
 0x11c   :  { %1639 = vmatpush1.bf16.msra.mxu1 %v3011_v25  ;;  %v3104_v25 = vld [vmem:[#allocation7 + $0x110] ss:$8 sps:$4 sm:$0xff]  }
 0x11d   :  { %1640 = vmatprep.subr.bf16.mxu1 %v3016_v52  ;;  %2147 = vmatpush1.bf16.msra.mxu0 %v3095_v63  ;;  %v3118_v63 = vld [vmem:[#allocation7 + $0x154] ss:$8 sps:$4 sm:$0xff]  }
 0x11e   :  { %2148 = vmatprep.subr.bf16.mxu0 %v3100_v3  ;;  %v3119_v3 = vld [vmem:[#allocation7 + $0x160] ss:$8 sps:$4 sm:$0xff]  }
 0x120   :  { %1641 = vmatpush1.bf16.msra.mxu1 %v3014_v54  ;;  %v3109_v54 = vld [vmem:[#allocation7 + $0x124] ss:$8 sps:$4 sm:$0xff]  }
 0x121   :  { %1642 = vmatprep.subr.bf16.mxu1 %v3019_v22  ;;  %2149 = vmatpush1.bf16.msra.mxu0 %v3098_v4  ;;  %v3124_v4 = vld [vmem:[#allocation7 + $0x174] ss:$8 sps:$4 sm:$0xff]  }
 0x122   :  { %2159 = vmatprep.subr.bf16.mxu0 %v3103_v7  ;;  %v3125_v7 = vld [vmem:[#allocation7 + $0x180] ss:$8 sps:$4 sm:$0xff]  }
 0x124   :  { %1643 = vmatpush1.bf16.msra.mxu1 %v3017_v55  ;;  %v3157_v55 = vld [vmem:[#allocation8 + $0x60] sm:$0xff]  }
 0x125   :  { %1644 = vmatprep.subr.bf16.mxu1 %v3022_v56  ;;  %v3107_v56 = vld [vmem:[#allocation7 + $0x120] ss:$8 sps:$4 sm:$0xff]  }
 0x128   :  { %1645 = vmatpush1.bf16.msra.mxu1 %v3020_v9  ;;  %v3158_v9 = vld [vmem:[#allocation8 + $0x20] sm:$0xff]  }
 0x129   :  { %1646 = vmatprep.subr.bf16.mxu1 %v3025_v57  ;;  %v3112_v57 = vld [vmem:[#allocation7 + $0x134] ss:$8 sps:$4 sm:$0xff]  }
 0x12c   :  { %1647 = vmatpush1.bf16.msra.mxu1 %v3023_v58  ;;  %v3159_v58 = vld [vmem:[#allocation8 + $0x68] sm:$0xff]  }
 0x12d   :  { %1648 = vmatprep.subr.bf16.mxu1 %v3028_v59  ;;  %v3110_v59 = vld [vmem:[#allocation7 + $0x130] ss:$8 sps:$4 sm:$0xff]  }
 0x130   :  { %1649 = vmatpush1.bf16.msra.mxu1 %v3026_v60  ;;  %v3160_v60 = vld [vmem:[#allocation8 + $0x28] sm:$0xff]  }
 0x131   :  { %1650 = vmatprep.subr.bf16.mxu1 %v3031_v61  ;;  %v3115_v61 = vld [vmem:[#allocation7 + $0x144] ss:$8 sps:$4 sm:$0xff]  }
 0x134   :  { %1651 = vmatpush1.bf16.msra.mxu1 %v3029_v1  ;;  %v3116_v1 = vld [vmem:[#allocation7 + $0x150] ss:$8 sps:$4 sm:$0xff]  }
 0x135   :  { %1652 = vmatprep.subr.bf16.mxu1 %v3034_v2  ;;  %v3121_v2 = vld [vmem:[#allocation7 + $0x164] ss:$8 sps:$4 sm:$0xff]  }
 0x138   :  { %1653 = vmatpush1.bf16.msra.mxu1 %v3032_v5  ;;  %v3122_v5 = vld [vmem:[#allocation7 + $0x170] ss:$8 sps:$4 sm:$0xff]  }
 0x139   :  { %1654 = vmatprep.subr.bf16.mxu1 %v3037_v6  ;;  %v3127_v6 = vld [vmem:[#allocation7 + $0x184] ss:$8 sps:$4 sm:$0xff]  }
 0x13c   :  { %1655 = vmatpush1.bf16.msra.mxu1 %v3035_v8  ;;  %v3130_v8 = vld [vmem:[#allocation7 + $0x194] ss:$8 sps:$4 sm:$0xff]  }
 0x13d   :  { %1656 = vmatprep.subr.bf16.mxu1 %v3040_v10  ;;  %v3128_v10 = vld [vmem:[#allocation7 + $0x190] ss:$8 sps:$4 sm:$0xff]  }
 0x140   :  { %1657 = vmatpush1.bf16.msra.mxu1 %v3038_v11  ;;  %v3133_v11 = vld [vmem:[#allocation7 + $0x1a4] ss:$8 sps:$4 sm:$0xff]  }
 0x141   :  { %1658 = vmatprep.subr.bf16.mxu1 %v3043_v12  ;;  %v3131_v12 = vld [vmem:[#allocation7 + $0x1a0] ss:$8 sps:$4 sm:$0xff]  }
 0x144   :  { %1659 = vmatpush1.bf16.msra.mxu1 %v3041_v13  ;;  %v3136_v13 = vld [vmem:[#allocation7 + $0x1b4] ss:$8 sps:$4 sm:$0xff]  }
 0x145   :  { %1660 = vmatprep.subr.bf16.mxu1 %v3046_v14  ;;  %v3134_v14 = vld [vmem:[#allocation7 + $0x1b0] ss:$8 sps:$4 sm:$0xff]  }
 0x148   :  { %1661 = vmatpush1.bf16.msra.mxu1 %v3044_v15  ;;  %v3139_v15 = vld [vmem:[#allocation7 + $0x1c4] ss:$8 sps:$4 sm:$0xff]  }
 0x149   :  { %1662 = vmatprep.subr.bf16.mxu1 %v3052_v16  ;;  %v3137_v16 = vld [vmem:[#allocation7 + $0x1c0] ss:$8 sps:$4 sm:$0xff]  }
 0x14c   :  { %1663 = vmatpush1.bf16.msra.mxu1 %v3050_v17  ;;  %v3142_v17 = vld [vmem:[#allocation7 + $0x1d4] ss:$8 sps:$4 sm:$0xff]  }
 0x14d   :  { %2678 = vmatprep.subr.bf16.mxu1 %v3149_v29 }
 0x14f   :  { %1665 = vmatmul.mubr.bf16.vlgmr.msra.gmra.mrb[4].mxu1 %v3419_v38  ;;  %v389_v38 = vrot.slane %v3433_v24, %v388_v26 }
 0x150   :  { %2679 = vmatpush3.bf16.msra.mxu1 %v3150_v30 }
 0x151   :  { %2680 = vmatprep.subr.bf16.mxu1 %v3151_v31 }
 0x154   :  { %2681 = vmatpush3.bf16.msra.mxu1 %v3152_v39 }
 0x155   :  { %2682 = vmatprep.subr.bf16.mxu1 %v3153_v42 }
 0x158   :  { %2683 = vmatpush3.bf16.msra.mxu1 %v3154_v47  ;;  %v3164_v47 = vld [vmem:[#allocation8 + $0x38] sm:$0xff]  }
 0x159   :  { %2684 = vmatprep.subr.bf16.mxu1 %v3155_v50 }
 0x15c   :  { %2685 = vmatpush3.bf16.msra.mxu1 %v3156_v0 }
 0x15d   :  { %2686 = vmatprep.subr.bf16.mxu1 %v3157_v55 }
 0x160   :  { %2687 = vmatpush3.bf16.msra.mxu1 %v3158_v9 }
 0x161   :  { %2688 = vmatprep.subr.bf16.mxu1 %v3159_v58 }
 0x162   :  { %v1420_v18 = vpop.f32.mrb[0].mxu1 }
 0x163   :  { %v1422_v19 = vpop.f32.mrb[1].mxu1  ;;  %v1421_v28 = vadd.f32 %v1420_v18, %v385_v27  ;;  %v3140_v18 = vld [vmem:[#allocation7 + $0x1d0] ss:$8 sps:$4 sm:$0xff]  }
 0x164   :  { %v1424_v20 = vpop.f32.mrb[2].mxu1  ;;  %v1423_v32 = vadd.f32 %v1422_v19, %v389_v38  ;;  %2689 = vmatpush3.bf16.msra.mxu1 %v3160_v60  ;;  %v3145_v19 = vld [vmem:[#allocation7 + $0x1e4] ss:$8 sps:$4 sm:$0xff]   ;;  %v3146_v27 = vld [vmem:[#allocation7 + $0x1f0] ss:$8 sps:$4 sm:$0xff]   ;;  %v392_v38 = vsub.s32 2, %v3388_v46 }
 0x165   :  { %v1425_v21 = vpop.f32.mrb[3].mxu1  ;;  %v3143_v20 = vld [vmem:[#allocation7 + $0x1e0] ss:$8 sps:$4 sm:$0xff]  }
 0x166   :  { %v3148_v21 = vld [vmem:[#allocation7 + $0x1f4] ss:$8 sps:$4 sm:$0xff]   ;;  %v393_v29 = vrot.slane %v3433_v24, %v392_v38 }
 0x1af   :  { %v1543_v33 = vpop.f32.mrb[0].mxu0 }
 0x1b0   :  { %v2701_v34 = vadd.f32 %v1543_v33, %v1421_v28  ;;  %v1545_v35 = vpop.f32.mrb[1].mxu0  ;;  %v396_v28 = vsub.s32 3, %v3388_v46 }
 0x1b1   :  { %v2703_v36 = vadd.f32 %v1545_v35, %v1423_v32  ;;  %v1547_v37 = vpop.f32.mrb[2].mxu0 }
 0x1b2   :  { %v1714_v40 = vmax.f32 %v2701_v34, 0.0  ;;  %v1548_v41 = vpop.f32.mrb[3].mxu0  ;;  %v397_v30 = vrot.slane %v3433_v24, %v396_v28  ;;  %v3163_v24 = vld [vmem:[#allocation8 + $0x78] sm:$0xff]  }
 0x1b3   :  { %v1715_v43 = vmax.f32 %v2703_v36, 0.0 }
 0x1b4   :  { %v1718_v48 = vpack.c.bf16 %v1714_v40, %v1714_v40 }
 0x1b5   :  { %v1719_v44 = vpack.c.bf16 %v1715_v43, %v1715_v43 }
 0x1b7   :  { %2150 = vmatprep.mubr.bf16.mxu0 %v1719_v44  ;;  %v3442_v51 = vpop.f32.mrb[4].mxu0  ;;  %v3161_v44 = vld [vmem:[#allocation8 + $0x70] sm:$0xff]  }
 0x1b8   :  { %2151 = vmatmul.mubr.bf16.vlgmr.msra.gmra.mrb[8].mxu0 %v1718_v48  ;;  %v3444_v53 = vpop.f32.mrb[5].mxu0  ;;  %2690 = vmatprep.subr.bf16.mxu1 %v3161_v44  ;;  %v1786_v48 = vld [vmem:[%s3478_s4] sm:$0x3] }
 0x1b9   :  { %2160 = vmatpush1.bf16.msra.mxu0 %v3101_v45  ;;  %v1711_v52 = vpop.f32.mrb[6].mxu0  ;;  %v3162_v45 = vld [vmem:[#allocation8 + $0x30] sm:$0xff]   ;;  %v1795_v50 = vrot.slane %v1786_v48, %v388_v26 }
 0x1ba   :  { %2161 = vmatprep.subr.bf16.mxu0 %v3106_v49  ;;  %v1712_v22 = vpop.f32.mrb[7].mxu0  ;;  %2691 = vmatpush3.bf16.msra.mxu1 %v3162_v45  ;;  %v1791_v49 = vrot.slane %v1786_v48, %v384_v23  ;;  %v2661_v23 = vld [vmem:[%s3480_s6] ss:$0 sm:$0xff] }
 0x1bb   :  { %2692 = vmatprep.subr.bf16.mxu1 %v3163_v24 }
 0x1bd   :  { %2162 = vmatpush1.bf16.msra.mxu0 %v3104_v25 }
 0x1be   :  { %2163 = vmatprep.subr.bf16.mxu0 %v3109_v54  ;;  %2693 = vmatpush3.bf16.msra.mxu1 %v3164_v47 }
 0x1c1   :  { %2164 = vmatpush1.bf16.msra.mxu0 %v3107_v56 }
 0x1c2   :  { %2165 = vmatprep.subr.bf16.mxu0 %v3112_v57 }
 0x1c5   :  { %2166 = vmatpush1.bf16.msra.mxu0 %v3110_v59 }
 0x1c6   :  { %2167 = vmatprep.subr.bf16.mxu0 %v3115_v61 }
 0x1c9   :  { %2168 = vmatpush1.bf16.msra.mxu0 %v3113_v62 }
 0x1ca   :  { %2169 = vmatprep.subr.bf16.mxu0 %v3118_v63 }
 0x1cd   :  { %2170 = vmatpush1.bf16.msra.mxu0 %v3116_v1 }
 0x1ce   :  { %2171 = vmatprep.subr.bf16.mxu0 %v3121_v2 }
 0x1d1   :  { %2172 = vmatpush1.bf16.msra.mxu0 %v3119_v3 }
 0x1d2   :  { %2173 = vmatprep.subr.bf16.mxu0 %v3124_v4 }
 0x1d5   :  { %2174 = vmatpush1.bf16.msra.mxu0 %v3122_v5 }
 0x1d6   :  { %2175 = vmatprep.subr.bf16.mxu0 %v3127_v6 }
 0x1d9   :  { %2176 = vmatpush1.bf16.msra.mxu0 %v3125_v7 }
 0x1da   :  { %2177 = vmatprep.subr.bf16.mxu0 %v3130_v8 }
 0x1dd   :  { %2178 = vmatpush1.bf16.msra.mxu0 %v3128_v10 }
 0x1de   :  { %2179 = vmatprep.subr.bf16.mxu0 %v3133_v11 }
 0x1e1   :  { %2180 = vmatpush1.bf16.msra.mxu0 %v3131_v12 }
 0x1e2   :  { %2181 = vmatprep.subr.bf16.mxu0 %v3136_v13 }
 0x1e5   :  { %2182 = vmatpush1.bf16.msra.mxu0 %v3134_v14 }
 0x1e6   :  { %2183 = vmatprep.subr.bf16.mxu0 %v3139_v15 }
 0x1e9   :  { %2184 = vmatpush1.bf16.msra.mxu0 %v3137_v16 }
 0x1ea   :  { %2185 = vmatprep.subr.bf16.mxu0 %v3142_v17 }
 0x1ed   :  { %2186 = vmatpush1.bf16.msra.mxu0 %v3140_v18 }
 0x1ee   :  { %2187 = vmatprep.subr.bf16.mxu0 %v3145_v19 }
 0x1f1   :  { %2188 = vmatpush1.bf16.msra.mxu0 %v3143_v20 }
 0x1f2   :  { %2189 = vmatprep.subr.bf16.mxu0 %v3148_v21 }
 0x1f5   :  { %2190 = vmatpush1.bf16.msra.mxu0 %v3146_v27 }
 0x222   :  { %v1666_v31 = vpop.f32.mrb[4].mxu1 }
 0x223   :  { %v2704_v32 = vadd.f32 %v1666_v31, %v393_v29  ;;  %v1668_v33 = vpop.f32.mrb[5].mxu1 }
 0x224   :  { %v2706_v34 = vadd.f32 %v1668_v33, %v397_v30  ;;  %v1670_v35 = vpop.f32.mrb[6].mxu1 }
 0x225   :  { %v2705_v36 = vadd.f32 %v2704_v32, %v3442_v51  ;;  %v1671_v37 = vpop.f32.mrb[7].mxu1 }
 0x226   :  { %v2707_v39 = vadd.f32 %v2706_v34, %v3444_v53 }
 0x227   :  { %v1716_v40 = vmax.f32 %v2705_v36, 0.0 }
 0x228   :  { %v1717_v41 = vmax.f32 %v2707_v39, 0.0 }
 0x229   :  { %v1720_v43 = vpack.c.bf16 %v1716_v40, %v1716_v40 }
 0x22a   :  { %v1721_v42 = vpack.c.bf16 %v1717_v41, %v1717_v41 }
 0x22c   :  { %2191 = vmatprep.mubr.bf16.mxu0 %v1721_v42 }
 0x22d   :  { %2192 = vmatmul.mubr.bf16.vlgmr.msra.gmra.mrb[8].mxu0 %v1720_v43 }
 0x300   :  { %v2193_v51 = vpop.f32.mrb[8].mxu0 }
 0x301   :  { %v2708_v53 = vadd.f32 %v2193_v51, %v1791_v49  ;;  %v2195_v25 = vpop.f32.mrb[9].mxu0 }
 0x302   :  { %v2709_v52 = vadd.f32 %v2195_v25, %v1795_v50  ;;  %v2197_v0 = vpop.f32.mrb[10].mxu0 }
 0x303   :  { %v2200_v54 = vmax.f32 %v2708_v53, 0.0  ;;  %v2198_v22 = vpop.f32.mrb[11].mxu0 }
 0x304   :  { %v2201_v55 = vmax.f32 %v2709_v52, 0.0 }
 0x305   :  { %v2202_v9 = vpack.c.bf16 %v2200_v54, %v2200_v54 }
 0x306   :  { %v2203_v56 = vpack.c.bf16 %v2201_v55, %v2201_v55 }
 0x308   :  { %2371 = vmatprep.mubr.bf16.mxu1 %v2203_v56 }
 0x309   :  { %2372 = vmatmul.mubr.bf16.vlgmr.msra.gmra.mrb[8].mxu1 %v2202_v9 }
 0x3dc   :  { %v2694_v57 = vpop.f32.mrb[8].mxu1 }
 0x3dd   :  { %v2695_v58 = vpop.f32.mrb[9].mxu1 }
 0x3de   :  { %v2696_v46 = vadd.f32 %v2695_v58, %v2694_v57  ;;  %v2697_v26 = vpop.f32.mrb[10].mxu1 }
 0x3df   :  { %v2698_v59 = vpop.f32.mrb[11].mxu1 }
 0x3e0   :  { %v2374_v60 = vadd.f32 %v2696_v46, %v2661_v23 }
 0x3e2   :  { %2379 = vst [vmem:[#allocation10] sm:$0xff] %v2374_v60 }
 0x3e3   :  { %2384 = vsyncadd [#allocation4], 96  ;;  %s3297_s11 = smov [#allocation10]  }
 0x3e4   :  { %s2385_s12 = sshll.u32 %s3297_s11, 4  ;;  %s2386_s12 = int_to_ptr.vmem [resolvable:$true] %s2385_s12 }
 0x3e5   :  { %s3253_s13 = scalar_lea.vmem %s2386_s12, 32  ;;  %s3257_s14 = scalar_lea.vmem %s2386_s12, 128 }
 0x3e6   :  { %p3254_p4 = scmp.ne.s32.totalorder %s2386_s12, %s3253_s13  ;;  %p3258_p5 = scmp.lt.s32.totalorder %s2386_s12, %s2386_s12 }
 0x3e7   :  { %p3259_p6 = scmp.lt.s32.totalorder %s3257_s14, %s3253_s13 }
 0x3e9   :  { %p3260_p7 = por %p3259_p6, %p3258_p5 }
 0x3eb   :  { %p3261_p8 = pnand %p3260_p7, %p3254_p4 }
 0x3ed   :  { %3264 = shalt.err (!%p3261_p8)
}
 0x3ee   :  { %s3265_s0 = scalar_lea.hbm %s3481_s7, 32 }
 0x3ef   :  { %p3266_p9 = scmp.ne.s32.totalorder %s3481_s7, %s3265_s0  ;;  %p3269_p10 = scmp.lt.u32.totalorder %s3265_s0, %s3481_s7 }
 0x3f1   :  { %p3271_p11 = pnand %p3269_p10, %p3266_p9 }
 0x3f3   :  { %3274 = shalt.err (!%p3271_p11)
}
 0x3f4   :  { %s3298_s20 = smov 32   ;;  %s3299_s21 = smov 2  }
 0x3f5   :  { %2391 = dma.vmem_to_hbm [thread:$0]  %s2386_s12, 32, %s3481_s7, [#allocation4], %s3298_s20, %s3298_s20, %s3299_s21  }
 0x3f6   :  { %3281 = dma.done.wait [#allocation4], 128  }
 0x3f7   :  { %3282 = vsyncadd [#allocation4], 4294967168 }
 0x3f8   :  { %2395 = vsyncpa [#allocation3], 1 }
 0x3f9   :  { %2396 = vsyncpa [#allocation6], 1 }
 0x3fa   :  { %2397 = vsyncpa [#allocation9], 1 }
 0x3fb   :  { %2398 = vsyncpa [#allocation4], 1 }

</bundles_post_ra>
